<compile_context>
chip_gen: v5e
topology: v5e:2x2
jax: 0.10.0
libtpu: 0.0.40
codegen_flags: <defaults>
</compile_context>

<pallas_src>
import functools

import jax
import jax.numpy as jnp
from jax.experimental import pallas as pl
from jax.experimental.pallas import tpu as pltpu


def _round_up(x, m):
    return ((x + m - 1) // m) * m


# ---------------------------------------------------------------------------
# Pallas kernel: fused dual-MLP forward on one batch tile.
#   refs = [W0f, W0s, b0, W1, b1, ..., W_{L-1}, b_{L-1}, out_ref]
# ---------------------------------------------------------------------------
def _fused_dual_mlp_kernel(n_linear, x1_ref, x2_ref, *refs):
    out_ref = refs[-1]
    p = refs[:-1]
    w0f, w0s, b0 = p[0], p[1], p[2]

    # Layer 0: two dots from the two raw inputs accumulate into one packed
    # hidden block (first path in cols [0:Nf0], second in [Nf0:Nf0+Ns0]).
    # MXU operands in the weight dtype (f32 or bf16), accumulation in f32.
    h = (jnp.dot(x1_ref[...].astype(w0f.dtype), w0f[...],
                 preferred_element_type=jnp.float32)
         + jnp.dot(x2_ref[...].astype(w0s.dtype), w0s[...],
                   preferred_element_type=jnp.float32)
         + b0[...])
    if n_linear > 1:
        h = jax.nn.sigmoid(h)              # EUP; Dropout(0.5) eval == identity

    # Static Python unroll over the (tiny, fixed) layer count keeps full LLO
    # scheduler visibility (dots / sigmoids interleave on MXU / EUP slots).
    for i in range(1, n_linear):
        w = p[2 * i + 1]
        b = p[2 * i + 2]
        h = jnp.dot(h.astype(w.dtype), w[...],
                    preferred_element_type=jnp.float32) + b[...]
        if i < n_linear - 1:
            h = jax.nn.sigmoid(h)

    out_ref[...] = h.astype(out_ref.dtype)


# ---------------------------------------------------------------------------
# Parameter construction (matches nn.Linear default init per sub-network).
# ---------------------------------------------------------------------------
def _init_linear(key, fan_in, fan_out):
    """PyTorch nn.Linear default: U(-1/sqrt(fan_in), 1/sqrt(fan_in))."""
    kw, kb = jax.random.split(key)
    bound = 1.0 / jnp.sqrt(jnp.float32(fan_in))
    w = jax.random.uniform(kw, (fan_in, fan_out), jnp.float32, -bound, bound)
    b = jax.random.uniform(kb, (1, fan_out), jnp.float32, -bound, bound)
    return w, b


def init_dec_params(key, sizes_array, number_of_channels):
    """Raw params: params[channel] = (first_list, second_list),
    each a flat [W0, b0, W1, b1, ...] in (in, out) layout."""
    first_sizes, second_sizes = sizes_array
    assert len(first_sizes) == len(second_sizes)
    n_linear = len(first_sizes) - 1
    params = []
    for _ in range(number_of_channels):
        first_p, second_p = [], []
        for i in range(n_linear):
            key, k1, k2 = jax.random.split(key, 3)
            w, b = _init_linear(k1, first_sizes[i], first_sizes[i + 1])
            first_p += [w, b]
            w, b = _init_linear(k2, second_sizes[i], second_sizes[i + 1])
            second_p += [w, b]
        params.append((first_p, second_p))
    return params


def build_fused_params(raw_params, sizes_array, weight_dtype=jnp.float32):
    """Per channel, build packed block-structured weights so each layer is a
    single dense dot.  Both paths share one column block (first in [0:Nf],
    second in [Nf:Nf+Ns]); only the final layer is padded to a multiple of 128
    so the output slab is lane-dense.  Zero blocks off the (block-)diagonal
    keep real columns numerically identical to the raw model."""
    first_sizes, second_sizes = sizes_array
    n_linear = len(first_sizes) - 1

    packed = []                                   # packed output width / layer
    for i in range(n_linear):
        w = first_sizes[i + 1] + second_sizes[i + 1]
        if i == n_linear - 1:
            w = _round_up(w, 128)                 # lane-dense final output
        packed.append(w)

    fused = []
    for first_p, second_p in raw_params:
        lp = []
        # --- layer 0: separate per-input weights (no padded concat x slab) --
        fW, fb = first_p[0], first_p[1]
        sW, sb = second_p[0], second_p[1]
        Nf, Ns = first_sizes[1], second_sizes[1]
        W0f = jnp.zeros((first_sizes[0], packed[0]), jnp.float32)
        W0f = W0f.at[:, :Nf].set(fW)
        W0s = jnp.zeros((second_sizes[0], packed[0]), jnp.float32)
        W0s = W0s.at[:, Nf:Nf + Ns].set(sW)
        b0 = jnp.zeros((1, packed[0]), jnp.float32)
        b0 = b0.at[:, :Nf].set(fb).at[:, Nf:Nf + Ns].set(sb)
        lp += [W0f.astype(weight_dtype), W0s.astype(weight_dtype), b0]
        # --- layers 1..L-1: block-structured packed weights -----------------
        for i in range(1, n_linear):
            fW, fb = first_p[2 * i], first_p[2 * i + 1]
            sW, sb = second_p[2 * i], second_p[2 * i + 1]
            Kf, Ks = first_sizes[i], second_sizes[i]
            Nf, Ns = first_sizes[i + 1], second_sizes[i + 1]
            W = jnp.zeros((packed[i - 1], packed[i]), jnp.float32)
            W = W.at[:Kf, :Nf].set(fW)
            W = W.at[Kf:Kf + Ks, Nf:Nf + Ns].set(sW)
            b = jnp.zeros((1, packed[i]), jnp.float32)
            b = b.at[:, :Nf].set(fb).at[:, Nf:Nf + Ns].set(sb)
            lp += [W.astype(weight_dtype), b]
        fused.append(lp)
    return fused


# ---------------------------------------------------------------------------
# Jitted wrapper: equivalent of forward(first, second, channel) for one channel
# ---------------------------------------------------------------------------
@functools.partial(jax.jit, static_argnums=(3, 4))
def _dec_forward_impl(first, second, layer_params, nf_out, ns_out):
    layer_params = tuple(layer_params)
    n_linear = (len(layer_params) - 1) // 2
    B, K1 = first.shape
    K2 = second.shape[1]
    n_out = layer_params[-1].shape[1]            # padded output width (x128)
    wdt = layer_params[0].dtype
    itemsize = jnp.dtype(wdt).itemsize

    # Batch tiling: large tiles amortize per-step pipeline overhead; aim for
    # >=2 grid steps on moderate batches so the "parallel" axis can shard
    # across both v7x TensorCores.  bf16 needs 16-row sublane alignment.
    align = 16 if itemsize < 4 else 8
    TB = min(512, max(align, _round_up(-(-B // 2), align)))
    B_pad = _round_up(B, TB)

    x1 = first.astype(wdt)
    x2 = second.astype(wdt)
    if B_pad != B:
        x1 = jnp.pad(x1, ((0, B_pad - B), (0, 0)))
        x2 = jnp.pad(x2, ((0, B_pad - B), (0, 0)))

    # VMEM budget: params and tiles are double-buffered by the default
    # pipeline -> count x2; cap below v7x's 64 MiB per-TC VMEM for headroom.
    param_bytes = sum(int(p.size) * p.dtype.itemsize for p in layer_params)
    tile_bytes = TB * (K1 + K2) * itemsize + TB * n_out * 4
    vmem_limit = 2 * param_bytes + 2 * tile_bytes + (8 << 20)
    vmem_limit = max(16 << 20, min(int(vmem_limit), 48 << 20))

    # Advisory cost estimate for XLA scheduling around the custom call.
    flops = 2 * B_pad * (K1 + K2) * layer_params[2].shape[1]
    for i in range(1, n_linear):
        w = layer_params[2 * i + 1]
        flops += 2 * B_pad * w.shape[0] * w.shape[1]
    transc = B_pad * sum(layer_params[2 * i + 2].shape[1]
                         for i in range(n_linear - 1))
    bytes_accessed = (B_pad * (K1 + K2) * itemsize + param_bytes
                      + B_pad * n_out * 4)

    kernel = functools.partial(_fused_dual_mlp_kernel, n_linear)

    in_specs = [pl.BlockSpec((TB, K1), lambda i: (i, 0)),
                pl.BlockSpec((TB, K2), lambda i: (i, 0))]
    for p_arr in layer_params:
        # Weights/biases resident in VMEM across all grid steps.
        in_specs.append(pl.BlockSpec(p_arr.shape, lambda i: (0, 0)))

    out = pl.pallas_call(
        kernel,
        out_shape=jax.ShapeDtypeStruct((B_pad, n_out), jnp.float32),
        grid=(B_pad // TB,),
        in_specs=in_specs,
        out_specs=pl.BlockSpec((TB, n_out), lambda i: (i, 0)),
        compiler_params=pltpu.CompilerParams(
            dimension_semantics=("parallel",),
            vmem_limit_bytes=vmem_limit),
        cost_estimate=pl.CostEstimate(flops=int(flops),
                                      transcendentals=int(transc),
                                      bytes_accessed=int(bytes_accessed)),
    )(x1, x2, *layer_params)

    # Packed layout of the final layer: first in [0:nf_out],
    # second in [nf_out:nf_out+ns_out]; the rest is zero padding.
    first_out = out[:B, :nf_out]
    second_out = out[:B, nf_out:nf_out + ns_out]
    return first_out, second_out


def dec_forward(fused_params, sizes_array, first_tensor, second_tensor, channel):
    layer_params = tuple(fused_params[channel])     # channel is a Python int
    nf_out = int(sizes_array[0][-1])
    ns_out = int(sizes_array[1][-1])
    return _dec_forward_impl(first_tensor, second_tensor, layer_params,
                             nf_out, ns_out)


# ---------------------------------------------------------------------------
# Pure-JAX reference on the RAW (unpadded, unfused) parameters.
# ---------------------------------------------------------------------------
def dec_forward_ref(raw_params, first_tensor, second_tensor, channel):
    def mlp(x, p):
        L = len(p) // 2
        h = x
        for i in range(L):
            h = jnp.dot(h, p[2 * i],
                        precision=jax.lax.Precision.HIGHEST) + p[2 * i + 1]
            if i < L - 1:
                h = jax.nn.sigmoid(h)
        return h
    first_p, second_p = raw_params[channel]
    return mlp(first_tensor, first_p), mlp(second_tensor, second_p)


if __name__ == "__main__":
    # Small synthetic configuration consistent with the module's constructor:
    #   sizes_array = ([first_in, hidden..., first_out],
    #                  [second_in, hidden..., second_out])
    sizes_array = ([64, 32, 4], [96, 48, 3])
    number_of_channels = 2

    key = jax.random.PRNGKey(0)
    kparams, kx1, kx2, kx3, kx4 = jax.random.split(key, 5)

    raw_params = init_dec_params(kparams, sizes_array, number_of_channels)
    fused_f32 = build_fused_params(raw_params, sizes_array, jnp.float32)
    fused_bf16 = build_fused_params(raw_params, sizes_array, jnp.bfloat16)

    ok = True
    # Small batch (single grid step) and larger batch (multi-step grid,
    # batch padding, >=2 parallel steps).
    for batch, kf, ks in ((8, kx1, kx2), (300, kx3, kx4)):
        first_tensor = jax.random.normal(kf, (batch, sizes_array[0][0]),
                                         jnp.float32)
        second_tensor = jax.random.normal(ks, (batch, sizes_array[1][0]),
                                          jnp.float32)
        for channel in range(number_of_channels):
            f_ref, s_ref = dec_forward_ref(raw_params, first_tensor,
                                           second_tensor, channel)

            # f32 MXU path: tight match against the f32 reference.
            f_out, s_out = dec_forward(fused_f32, sizes_array,
                                       first_tensor, second_tensor, channel)
            jax.block_until_ready((f_out, s_out))
            ok &= bool(jnp.allclose(f_out, f_ref, atol=1e-4, rtol=1e-4))
            ok &= bool(jnp.allclose(s_out, s_ref, atol=1e-4, rtol=1e-4))

            # bf16 MXU path (v6e/v7x throughput): loose tolerance vs f32 ref.
            f_out, s_out = dec_forward(fused_bf16, sizes_array,
                                       first_tensor, second_tensor, channel)
            jax.block_until_ready((f_out, s_out))
            ok &= bool(jnp.allclose(f_out, f_ref, atol=5e-2, rtol=5e-2))
            ok &= bool(jnp.allclose(s_out, s_ref, atol=5e-2, rtol=5e-2))

    if ok:
        print("KERNEL_OK")
    else:
        print("KERNEL_MISMATCH")
</pallas_src>

<mosaic_0001>
module attributes {stable_mosaic.version = 11 : i64} {
  func.func @_fused_dual_mlp_kernel(%arg0: i32, %arg1: memref<8x64xf32, #tpu.memory_space<vmem>>, %arg2: memref<8x96xf32, #tpu.memory_space<vmem>>, %arg3: memref<64x80xf32, #tpu.memory_space<vmem>>, %arg4: memref<96x80xf32, #tpu.memory_space<vmem>>, %arg5: memref<1x80xf32, #tpu.memory_space<vmem>>, %arg6: memref<80x128xf32, #tpu.memory_space<vmem>>, %arg7: memref<1x128xf32, #tpu.memory_space<vmem>>, %arg8: memref<8x128xf32, #tpu.memory_space<vmem>>) attributes {dimension_semantics = [#tpu.dimension_semantics<parallel>], iteration_bounds = array<i64: 1>, scalar_prefetch = 0 : i64, scratch_operands = 0 : i64, tpu.core_type = #tpu.core_type<tc>, window_params = [{transform_indices = @transform_0, window_bounds = array<i64: 8, 64>}, {transform_indices = @transform_1, window_bounds = array<i64: 8, 96>}, {pipeline_mode = #tpu.pipeline_mode<synchronous>, transform_indices = @transform_2, window_bounds = array<i64: 64, 80>}, {pipeline_mode = #tpu.pipeline_mode<synchronous>, transform_indices = @transform_3, window_bounds = array<i64: 96, 80>}, {pipeline_mode = #tpu.pipeline_mode<synchronous>, transform_indices = @transform_4, window_bounds = array<i64: 1, 80>}, {pipeline_mode = #tpu.pipeline_mode<synchronous>, transform_indices = @transform_5, window_bounds = array<i64: 80, 128>}, {pipeline_mode = #tpu.pipeline_mode<synchronous>, transform_indices = @transform_6, window_bounds = array<i64: 1, 128>}, {transform_indices = @transform_7, window_bounds = array<i64: 8, 128>}]} {
    %c0 = arith.constant 0 : index
    %c0_0 = arith.constant 0 : index
    %0 = vector.load %arg1[%c0, %c0_0] : memref<8x64xf32, #tpu.memory_space<vmem>>, vector<8x64xf32>
    %c0_1 = arith.constant 0 : index
    %c0_2 = arith.constant 0 : index
    %1 = vector.load %arg3[%c0_1, %c0_2] : memref<64x80xf32, #tpu.memory_space<vmem>>, vector<64x80xf32>
    %cst = arith.constant dense<0.000000e+00> : vector<8x80xf32>
    %2 = tpu.matmul %0, %1, %cst {dimension_numbers = #tpu.dot_dimension_numbers<[1], [0], [0], [1], [0, 0, 1, 1], [], []>} : vector<8x64xf32>, vector<64x80xf32>, vector<8x80xf32> -> vector<8x80xf32>
    %c0_3 = arith.constant 0 : index
    %c0_4 = arith.constant 0 : index
    %3 = vector.load %arg2[%c0_3, %c0_4] : memref<8x96xf32, #tpu.memory_space<vmem>>, vector<8x96xf32>
    %c0_5 = arith.constant 0 : index
    %c0_6 = arith.constant 0 : index
    %4 = vector.load %arg4[%c0_5, %c0_6] : memref<96x80xf32, #tpu.memory_space<vmem>>, vector<96x80xf32>
    %cst_7 = arith.constant dense<0.000000e+00> : vector<8x80xf32>
    %5 = tpu.matmul %3, %4, %cst_7 {dimension_numbers = #tpu.dot_dimension_numbers<[1], [0], [0], [1], [0, 0, 1, 1], [], []>} : vector<8x96xf32>, vector<96x80xf32>, vector<8x80xf32> -> vector<8x80xf32>
    %6 = arith.addf %2, %5 : vector<8x80xf32>
    %c0_8 = arith.constant 0 : index
    %c0_9 = arith.constant 0 : index
    %7 = vector.load %arg5[%c0_8, %c0_9] : memref<1x80xf32, #tpu.memory_space<vmem>>, vector<1x80xf32>
    %8 = vector.broadcast %7 : vector<1x80xf32> to vector<8x80xf32>
    %9 = arith.addf %6, %8 : vector<8x80xf32>
    %10 = arith.negf %9 : vector<8x80xf32>
    %11 = math.exp %10 : vector<8x80xf32>
    %cst_10 = arith.constant 1.000000e+00 : f32
    %12 = vector.broadcast %cst_10 : f32 to vector<8x80xf32>
    %13 = arith.addf %12, %11 : vector<8x80xf32>
    %14 = arith.divf %12, %13 : vector<8x80xf32>
    %c0_11 = arith.constant 0 : index
    %c0_12 = arith.constant 0 : index
    %15 = vector.load %arg6[%c0_11, %c0_12] : memref<80x128xf32, #tpu.memory_space<vmem>>, vector<80x128xf32>
    %cst_13 = arith.constant dense<0.000000e+00> : vector<8x128xf32>
    %16 = tpu.matmul %14, %15, %cst_13 {dimension_numbers = #tpu.dot_dimension_numbers<[1], [0], [0], [1], [0, 0, 1, 1], [], []>} : vector<8x80xf32>, vector<80x128xf32>, vector<8x128xf32> -> vector<8x128xf32>
    %c0_14 = arith.constant 0 : index
    %c0_15 = arith.constant 0 : index
    %17 = vector.load %arg7[%c0_14, %c0_15] : memref<1x128xf32, #tpu.memory_space<vmem>>, vector<1x128xf32>
    %18 = vector.broadcast %17 : vector<1x128xf32> to vector<8x128xf32>
    %19 = arith.addf %16, %18 : vector<8x128xf32>
    %c0_16 = arith.constant 0 : index
    %c0_17 = arith.constant 0 : index
    %20 = vector.load %arg8[%c0_16, %c0_17] : memref<8x128xf32, #tpu.memory_space<vmem>>, vector<8x128xf32>
    tpu.vector_store %arg8[%c0_16, %c0_17], %19 {strides = array<i32>} : memref<8x128xf32, #tpu.memory_space<vmem>>, vector<8x128xf32>,
    return
  }
  func.func @transform_0(%arg0: i32) -> (i32, i32) {
    %c0_i32 = arith.constant 0 : i32
    %c0_i32_0 = arith.constant 0 : i32
    return %arg0, %c0_i32 : i32, i32
  }
  func.func @transform_1(%arg0: i32) -> (i32, i32) {
    %c0_i32 = arith.constant 0 : i32
    %c0_i32_0 = arith.constant 0 : i32
    return %arg0, %c0_i32 : i32, i32
  }
  func.func @transform_2(%arg0: i32) -> (i32, i32) {
    %c0_i32 = arith.constant 0 : i32
    %c0_i32_0 = arith.constant 0 : i32
    %c0_i32_1 = arith.constant 0 : i32
    return %c0_i32, %c0_i32_0 : i32, i32
  }
  func.func @transform_3(%arg0: i32) -> (i32, i32) {
    %c0_i32 = arith.constant 0 : i32
    %c0_i32_0 = arith.constant 0 : i32
    %c0_i32_1 = arith.constant 0 : i32
    return %c0_i32, %c0_i32_0 : i32, i32
  }
  func.func @transform_4(%arg0: i32) -> (i32, i32) {
    %c0_i32 = arith.constant 0 : i32
    %c0_i32_0 = arith.constant 0 : i32
    %c0_i32_1 = arith.constant 0 : i32
    return %c0_i32, %c0_i32_0 : i32, i32
  }
  func.func @transform_5(%arg0: i32) -> (i32, i32) {
    %c0_i32 = arith.constant 0 : i32
    %c0_i32_0 = arith.constant 0 : i32
    %c0_i32_1 = arith.constant 0 : i32
    return %c0_i32, %c0_i32_0 : i32, i32
  }
  func.func @transform_6(%arg0: i32) -> (i32, i32) {
    %c0_i32 = arith.constant 0 : i32
    %c0_i32_0 = arith.constant 0 : i32
    %c0_i32_1 = arith.constant 0 : i32
    return %c0_i32, %c0_i32_0 : i32, i32
  }
  func.func @transform_7(%arg0: i32) -> (i32, i32) {
    %c0_i32 = arith.constant 0 : i32
    %c0_i32_0 = arith.constant 0 : i32
    return %arg0, %c0_i32 : i32, i32
  }
}

</mosaic_0001>

<bundles_post_ra>
// kernel: _dec_forward_impl.1
= control target key start
LH: loop header
LB: loop body
LE: loop exit
PB: predicated region body
PF: predicated region fallthrough
CT: control target
= control target key end

     0   :  { %vm72_vm0 = vcmask 523264   ;;  %vm48_vm1 = vcmask 785408   ;;  %vm134_vm5 = vcmask 654336   ;;  %s318_s3 = inlined_call_operand.vmem [shape: f32[96,80], index: 3, kind: input, shape index: {}]   ;;  %s319_s2 = inlined_call_operand.vmem [shape: f32[64,80], index: 2, kind: input, shape index: {}]   ;;  %s320_s0 = inlined_call_operand.vmem [shape: f32[8,64], index: 0, kind: input, shape index: {}]   ;;  %s321_s1 = inlined_call_operand.vmem [shape: f32[8,96], index: 1, kind: input, shape index: {}]   ;;  %s322_s4 = inlined_call_operand.vmem [shape: f32[1,80], index: 4, kind: input, shape index: {}]   ;;  %s323_s6 = inlined_call_operand.vmem [shape: f32[1,128], index: 6, kind: input, shape index: {}]   ;;  %s324_s5 = inlined_call_operand.vmem [shape: f32[80,128], index: 5, kind: input, shape index: {}]   ;;  %s325_s7 = inlined_call_operand.vmem [shape: f32[8,128], index: 7, kind: output, shape index: {}]  }
   0x1   :  { %v47_v0 = vld [vmem:[%s318_s3 + $0x58] sm:$0xff]  ;;  %v46_v1 = vld [vmem:[%s318_s3 + $0x50] sm:$0xff]  ;;  %v45_v3 = vld [vmem:[%s318_s3 + $0x48] sm:$0xff] }
   0x2   :  { %56 = vmatpush.msra.mxu0 %v47_v0  ;;  %v34_v2 = vld [vmem:[%s319_s2 + $0x38] sm:$0xff]  ;;  %v33_v4 = vld [vmem:[%s319_s2 + $0x30] sm:$0xff]  ;;  %v32_v5 = vld [vmem:[%s319_s2 + $0x28] sm:$0xff] }
   0x3   :  { %84 = vmatpush.msra.mxu1 %v34_v2  ;;  %v44_v6 = vld [vmem:[%s318_s3 + $0x40] sm:$0xff]  ;;  %v43_v8 = vld [vmem:[%s318_s3 + $0x38] sm:$0xff]  ;;  %v42_v10 = vld [vmem:[%s318_s3 + $0x30] sm:$0xff] }
   0x4   :  { %57 = vmatpush.msra.mxu0 %v46_v1  ;;  %v31_v7 = vld [vmem:[%s319_s2 + $0x20] sm:$0xff]  ;;  %v30_v9 = vld [vmem:[%s319_s2 + $0x18] sm:$0xff]  ;;  %v29_v11 = vld [vmem:[%s319_s2 + $0x10] sm:$0xff] }
   0x5   :  { %85 = vmatpush.msra.mxu1 %v33_v4  ;;  %v41_v12 = vld [vmem:[%s318_s3 + $0x28] sm:$0xff]  ;;  %v40_v14 = vld [vmem:[%s318_s3 + $0x20] sm:$0xff]  ;;  %v39_v16 = vld [vmem:[%s318_s3 + $0x18] sm:$0xff] }
   0x6   :  { %58 = vmatpush.msra.mxu0 %v45_v3  ;;  %v28_v13 = vld [vmem:[%s319_s2 + $0x8] sm:$0xff]  ;;  %v27_v15 = vld [vmem:[%s319_s2] sm:$0xff]  ;;  %v38_v18 = vld [vmem:[%s318_s3 + $0x10] sm:$0xff] }
   0x7   :  { %86 = vmatpush.msra.mxu1 %v32_v5  ;;  %v26_v17 = vld [vmem:[%s320_s0] sm:$0xff]  ;;  %v37_v19 = vld [vmem:[%s318_s3 + $0x8] sm:$0xff]  ;;  %v127_v24 = vld [vmem:[%s324_s5 + $0x38] sm:$0xff] }
   0x8   :  { %59 = vmatpush.msra.mxu0 %v44_v6  ;;  %v36_v20 = vld [vmem:[%s318_s3] sm:$0xff]  ;;  %v129_v22 = vld [vmem:[%s324_s5 + $0x48] sm:$0xff]  ;;  %v126_v25 = vld [vmem:[%s324_s5 + $0x30] sm:$0xff] }
   0x9   :  { %87 = vmatpush.msra.mxu1 %v31_v7  ;;  %v35_v21 = vld [vmem:[%s321_s1] sm:$0xff]  ;;  %144 = vmatpush.msra.mxu2 %v129_v22  ;;  %v125_v26 = vld [vmem:[%s324_s5 + $0x28] sm:$0xff]  ;;  %v123_v28 = vld [vmem:[%s324_s5 + $0x18] sm:$0xff] }
   0xa   :  { %60 = vmatpush.msra.mxu0 %v43_v8  ;;  %v128_v23 = vld [vmem:[%s324_s5 + $0x40] sm:$0xff]  ;;  %v122_v29 = vld [vmem:[%s324_s5 + $0x10] sm:$0xff]  ;;  %v121_v30 = vld [vmem:[%s324_s5 + $0x8] sm:$0xff] }
   0xb   :  { %88 = vmatpush.msra.mxu1 %v30_v9  ;;  %145 = vmatpush.msra.mxu2 %v128_v23  ;;  %v124_v27 = vld [vmem:[%s324_s5 + $0x20] sm:$0xff] }
   0xc   :  { %61 = vmatpush.msra.mxu0 %v42_v10  ;;  %v120_v31 = vld [vmem:[%s324_s5] sm:$0xff] }
   0xd   :  { %89 = vmatpush.msra.mxu1 %v29_v11  ;;  %146 = vmatpush.msra.mxu2 %v127_v24  ;;  %v167_v33 = vld [vmem:[%s322_s4] ss:$0 sm:$0xff] }
   0xe   :  { %62 = vmatpush.msra.mxu0 %v41_v12  ;;  %v168_v50 = vld [vmem:[%s323_s6] ss:$0 sm:$0xff] }
   0xf   :  { %90 = vmatpush.msra.mxu1 %v28_v13  ;;  %147 = vmatpush.msra.mxu2 %v126_v25 }
  0x10   :  { %63 = vmatpush.msra.mxu0 %v40_v14 }
  0x11   :  { %91 = vmatpush.msra.mxu1 %v27_v15  ;;  %148 = vmatpush.msra.mxu2 %v125_v26 }
  0x12   :  { %64 = vmatpush.msra.mxu0 %v39_v16  ;;  %164 = vmatmul.msk.f32.vlgmr.msra.gmra.mxu1 %vm72_vm0, %v26_v17 }
  0x13   :  { %149 = vmatpush.msra.mxu2 %v124_v27 }
  0x14   :  { %65 = vmatpush.msra.mxu0 %v38_v18 }
  0x15   :  { %150 = vmatpush.msra.mxu2 %v123_v28 }
  0x16   :  { %66 = vmatpush.msra.mxu0 %v37_v19 }
  0x17   :  { %151 = vmatpush.msra.mxu2 %v122_v29 }
  0x18   :  { %67 = vmatpush.msra.mxu0 %v36_v20 }
  0x19   :  { %163 = vmatmul.msk.f32.vlgmr.msra.gmra.mxu0 %vm48_vm1, %v35_v21  ;;  %152 = vmatpush.msra.mxu2 %v121_v30 }
  0x1b   :  { %153 = vmatpush.msra.mxu2 %v120_v31 }
  0x8f   :  { %v93_v32 = vpop.f32.mrf.mxu1 }
  0x96   :  { %v69_v34 = vpop.f32.mrf.mxu0 }
  0x97   :  { %v94_v35 = vadd.f32 %v93_v32, %v69_v34 }
  0x99   :  { %v100_v36 = vadd.f32 %v167_v33, %v94_v35 }
  0x9b   :  { %v165_v37 = vmul.f32 -1.442695, %v100_v36 }
  0x9d   :  { %169 = vpow2.f32 %v165_v37 }
  0xa3   :  { %v170_v38 = vpop.eup %169 }
  0xa4   :  { %v104_v39 = vadd.f32 1.0, %v170_v38 }
  0xa6   :  { %171 = vrcp.f32 %v104_v39  ;;  %v116_v43 = vand.u32 2147483648, %v104_v39  ;;  %v114_v45 = vand.u32 2147483647, %v104_v39  ;;  %vm110_vm3 = vweird.f32 %v104_v39 }
  0xa8   :  { %v117_v47 = vor.u32 1.1754944e-38, %v116_v43  ;;  %vm115_vm6 = vcmp.eq.f32.partialorder %v114_v45, 8.507059e+37 }
  0xac   :  { %v172_v40 = vpop.eup %171 }
  0xad   :  { %v106_v41 = vmul.f32 %v172_v40, %v104_v39  ;;  %vm111_vm2 = vweird.f32 %v172_v40 }
  0xae   :  { %vm112_vm4 = vmor %vm110_vm3, %vm111_vm2 }
  0xaf   :  { %v107_v42 = vsub.f32 1.0, %v106_v41 }
  0xb1   :  { %v108_v44 = vmul.f32 %v172_v40, %v107_v42 }
  0xb3   :  { %v109_v46 = vadd.f32 %v172_v40, %v108_v44 }
  0xb5   :  { %v113_v48 = vsel %vm112_vm4, %v172_v40, %v109_v46 }
  0xb6   :  { %v118_v49 = vsel %vm115_vm6, %v117_v47, %v113_v48 }
  0xb7   :  { %166 = vmatmul.msk.f32.vlgmr.msra.gmra.mxu2 %vm134_vm5, %v118_v49 }
 0x13a   :  { %v155_v51 = vpop.f32.mrf.mxu2 }
 0x13b   :  { %v156_v52 = vadd.f32 %v168_v50, %v155_v51 }
 0x13d   :  { %158 = vst [vmem:[%s325_s7] sm:$0xff] %v156_v52 }

</bundles_post_ra>
